<compile_context>
chip_gen: v7x
topology: tpu7x:2x2x1
jax: 0.10.0
libtpu: 0.0.40
codegen_flags: <defaults>
</compile_context>

<pallas_src>
import functools

import jax
import jax.numpy as jnp
from jax.experimental import pallas as pl
from jax.experimental.pallas import tpu as pltpu

BN_EPS = 1e-5


def _round_up(x, m):
    return ((x + m - 1) // m) * m


def _batchnorm_train(x, gamma, beta):
    """Training-mode BatchNorm1d; two-pass variance (no E[x^2]-mu^2 cancellation)."""
    mu = jnp.mean(x, axis=0, keepdims=True)
    var = jnp.mean(jnp.square(x - mu), axis=0, keepdims=True)
    return (x - mu) * jax.lax.rsqrt(var + BN_EPS) * gamma + beta


# ----------------------------------------------------------------------------
# Kernel
# ----------------------------------------------------------------------------
def _sdn_kernel(
    feat_ref, di_ref,
    w1_ref, w2_ref, whead_ref, wdi_ref, wt2_ref, rp_ref,
    ds_ref, logits_ref, mi_ref,
    *, db, H2, H, Ht, LPAD, KH,
):
    f32, bf16 = jnp.float32, jnp.bfloat16
    W1 = db * H2          # layer-1 output width for this step
    W2 = db * H           # layer-2 / ds width
    WT = db * Ht          # MINE hidden width

    x_bf = feat_ref[...].astype(bf16)            # [N, F]
    di_bf = di_ref[...].astype(bf16)             # [N, H]

    # Coalesced 1-row parameters: rows 0..7 = b1,g1,be1,b2,g2,be2,bhead,bt2.
    rp = rp_ref[0]                                # [8, LMAX] f32
    b1, g1, be1 = rp[0:1, :W1], rp[1:2, :W1], rp[2:3, :W1]
    b2, g2, be2 = rp[3:4, :W2], rp[4:5, :W2], rp[5:6, :W2]
    bhead = rp[6:7, :KH]
    bt2 = rp[7:8, :db]

    # ---- layer 1, all db domains in ONE GEMM (columns are domain-major).
    h = jnp.dot(x_bf, w1_ref[0], preferred_element_type=f32) + b1      # [N, db*2H]
    h = jnp.maximum(_batchnorm_train(h, g1, be1), 0.0)

    # ---- layer 2, block-diagonal weights: ONE GEMM for all domains.
    z = jnp.dot(h.astype(bf16), w2_ref[0], preferred_element_type=f32) + b2
    ds = jnp.maximum(_batchnorm_train(z, g2, be2), 0.0)                # [N, db*H]
    ds_ref[0] = ds

    # ---- fused head GEMM: [classifier logits (padded to LPAD) | MINE ds-proj + bt1]
    fused = jnp.dot(ds.astype(bf16), whead_ref[0],
                    preferred_element_type=f32) + bhead                # [N, KH]
    logits_ref[0] = fused[:, :LPAD]               # lane-dense (multiple-of-128) store
    p_ds = fused[:, LPAD:LPAD + WT]               # [N, db*Ht]  (128-aligned slice)

    # ---- MINE first layer: shared di projection, ONE GEMM for all domains.
    p_di = jnp.dot(di_bf, wdi_ref[0], preferred_element_type=f32)      # [N, db*Ht]
    t_joint = jnp.maximum(p_di + p_ds, 0.0)
    # roll commutes with a row-wise matmul and with the row-constant bias, so the
    # marginal reuses p_ds (deterministic stand-in for the random batch shuffle).
    t_marg = jnp.maximum(p_di + pltpu.roll(p_ds, shift=1, axis=0), 0.0)

    # ---- MINE second (1-wide per domain) layer as a block-diagonal f32 matmul:
    # the per-domain lane reductions ride the otherwise-idle MXU.
    wt2 = wt2_ref[0]                                                   # [db*Ht, db]
    Tj = jnp.dot(t_joint, wt2, preferred_element_type=f32) + bt2       # [N, db]
    Tm = jnp.dot(t_marg, wt2, preferred_element_type=f32) + bt2        # [N, db]

    # ---- logsumexp-stabilized MINE lower bound, vectorized over db domains.
    mean_j = jnp.mean(Tj, axis=0, keepdims=True)                       # [1, db]
    m = jnp.max(Tm, axis=0, keepdims=True)
    lme = m + jnp.log(jnp.mean(jnp.exp(Tm - m), axis=0, keepdims=True))
    mi_ref[0] = lme - mean_j                       # loss = -(E[Tj] - logE[exp Tm])


# ----------------------------------------------------------------------------
# One-time parameter packing (hoisted out of the forward path)
# ----------------------------------------------------------------------------
def _block_diag_per_step(w_steps):
    """[S, db, I, O] -> [S, db*I, db*O] block-diagonal."""
    s, db, I, O = w_steps.shape
    eye = jnp.eye(db, dtype=w_steps.dtype)
    out = jnp.einsum("jk,sjab->sjakb", eye, w_steps)
    return out.reshape(s, db * I, db * O)


def pack_params(params, domains_per_step):
    """Repack PyTorch-layout params into kernel layout. Call ONCE and reuse."""
    db = domains_per_step
    D, H2, F = params["w1"].shape
    H = H2 // 2
    C = params["wc"].shape[1]
    Ht = params["wt1"].shape[1]
    assert D % db == 0, "domains_per_step must divide num_domains"
    S = D // db
    LPAD = _round_up(db * C, 128)                 # lane-padded logits segment
    MPAD = _round_up(db * Ht, 128)                # lane-padded MINE segment
    KH = LPAD + MPAD
    LMAX = max(db * H2, db * H, KH, db)
    f32, bf16 = jnp.float32, jnp.bfloat16

    def dom_concat(w_t):      # [D, I, O] -> [S, I, db*O]  (shared-input fusion)
        I, O = w_t.shape[1], w_t.shape[2]
        return jnp.transpose(w_t.reshape(S, db, I, O), (0, 2, 1, 3)).reshape(S, I, db * O)

    def steps(w_t):           # [D, I, O] -> [S, db, I, O]
        return w_t.reshape(S, db, w_t.shape[1], w_t.shape[2])

    w1_t = jnp.transpose(params["w1"], (0, 2, 1))                    # [D, F, 2H]
    w2_t = jnp.transpose(params["w2"], (0, 2, 1))                    # [D, 2H, H]
    wc_t = jnp.transpose(params["wc"], (0, 2, 1))                    # [D, H, C]
    wdi_t = jnp.transpose(params["wt1"][:, :, :H], (0, 2, 1))        # [D, H, Ht]
    wds_t = jnp.transpose(params["wt1"][:, :, H:], (0, 2, 1))        # [D, H, Ht]
    wt2_t = jnp.transpose(params["wt2"], (0, 2, 1))                  # [D, Ht, 1]

    w1cat = dom_concat(w1_t).astype(bf16)                            # [S, F, db*2H]
    w2blk = _block_diag_per_step(steps(w2_t)).astype(bf16)           # [S, db*2H, db*H]
    wcblk = jnp.pad(_block_diag_per_step(steps(wc_t)),
                    ((0, 0), (0, 0), (0, LPAD - db * C)))            # [S, db*H, LPAD]
    wdsblk = jnp.pad(_block_diag_per_step(steps(wds_t)),
                     ((0, 0), (0, 0), (0, MPAD - db * Ht)))          # [S, db*H, MPAD]
    whead = jnp.concatenate([wcblk, wdsblk], axis=-1).astype(bf16)   # [S, db*H, KH]
    wdicat = dom_concat(wdi_t).astype(bf16)                          # [S, H, db*Ht]
    wt2blk = _block_diag_per_step(steps(wt2_t)).astype(f32)          # [S, db*Ht, db]

    def row(p):               # [D, 1, w] -> [S, db*w] padded in lanes to LMAX
        r = p.reshape(S, -1).astype(f32)
        return jnp.pad(r, ((0, 0), (0, LMAX - r.shape[-1])))

    bhead = jnp.concatenate(
        [jnp.pad(params["bc"].reshape(S, db * C), ((0, 0), (0, LPAD - db * C))),
         jnp.pad(params["bt1"].reshape(S, db * Ht), ((0, 0), (0, MPAD - db * Ht)))],
        axis=-1).astype(f32)                                         # [S, KH]
    rowparams = jnp.stack(
        [row(params["b1"]), row(params["g1"]), row(params["be1"]),
         row(params["b2"]), row(params["g2"]), row(params["be2"]),
         jnp.pad(bhead, ((0, 0), (0, LMAX - KH))),
         row(params["bt2"])],
        axis=1)                                                      # [S, 8, LMAX]

    packed = dict(w1=w1cat, w2=w2blk, whead=whead, wdi=wdicat, wt2=wt2blk,
                  rowparams=rowparams)
    meta = dict(D=D, db=db, steps=S, F=F, H=H, H2=H2, Ht=Ht, C=C,
                LPAD=LPAD, KH=KH, LMAX=LMAX)
    return packed, meta


# ----------------------------------------------------------------------------
# VMEM / TensorCore heuristics
# ----------------------------------------------------------------------------
def _vmem_step_bytes(N, F, H, C, db):
    H2, Ht = 2 * H, H
    LPAD = _round_up(db * C, 128)
    MPAD = _round_up(db * Ht, 128)
    KH = LPAD + MPAD
    LMAX = max(db * H2, db * H, KH, db)
    per_step = ((F * db * H2 + db * H2 * db * H + db * H * KH + H * db * Ht) * 2
                + (db * Ht * db + 8 * LMAX) * 4
                + (N * db * H + N * LPAD + db) * 4)
    fixed = (N * F + N * H) * 4
    return 2 * (per_step + fixed)        # double-buffered blocks


def _tpu_topology():
    cores, vmem_cap = 1, 64 * 1024 * 1024
    try:
        vmem_cap = int(pltpu.get_tpu_info().vmem_capacity_bytes)
    except Exception:
        pass
    try:
        kind = jax.devices()[0].device_kind.lower()
        if ("v7" in kind) or ("v4" in kind) or ("v5p" in kind):
            cores = 2                    # 2 TensorCores share the chip
    except Exception:
        pass
    return cores, vmem_cap


def _pick_domains_per_step(D, N, F, H, C):
    cores, vmem_cap = _tpu_topology()
    budget = vmem_cap // 2               # leave headroom for compiler scratch
    best = 1
    for db in range(1, D + 1):
        if D % db:
            continue
        if cores > 1 and (D // db) < min(2 * cores, D):
            continue                     # keep >=2 grid steps per TensorCore
        if _vmem_step_bytes(N, F, H, C, db) <= budget:
            best = db
    return best


# ----------------------------------------------------------------------------
# Forward wrapper
# ----------------------------------------------------------------------------
def sdn_forward(features, di_features, packed, meta):
    """All-domain forward: (ds_features [D,N,H], mlp_outputs [D,N,C], mi_losses [D])."""
    N, F = features.shape
    S, db, D = meta["steps"], meta["db"], meta["D"]
    H, H2, Ht = meta["H"], meta["H2"], meta["Ht"]
    C, LPAD, KH, LMAX = meta["C"], meta["LPAD"], meta["KH"], meta["LMAX"]
    f32 = jnp.float32

    step_block = lambda shape: pl.BlockSpec((1,) + shape, lambda g: (g, 0, 0))
    in_specs = [
        pl.BlockSpec((N, F), lambda g: (0, 0)),     # features (step-invariant)
        pl.BlockSpec((N, H), lambda g: (0, 0)),     # di_features
        step_block((F, db * H2)),                   # w1 (domain-concat)
        step_block((db * H2, db * H)),              # w2 (block-diag)
        step_block((db * H, KH)),                   # fused head (block-diag, padded)
        step_block((H, db * Ht)),                   # MINE di-projection weights
        step_block((db * Ht, db)),                  # MINE 1-wide layer (block-diag)
        step_block((8, LMAX)),                      # coalesced 1-row params
    ]
    out_specs = (
        step_block((N, db * H)),                    # ds (lane-dense when db*H >= 128)
        step_block((N, LPAD)),                      # padded logits (lane-dense)
        step_block((1, db)),                        # mi losses (single vector store)
    )
    out_shape = (
        jax.ShapeDtypeStruct((S, N, db * H), f32),
        jax.ShapeDtypeStruct((S, N, LPAD), f32),
        jax.ShapeDtypeStruct((S, 1, db), f32),
    )

    cp_kwargs = dict(dimension_semantics=("parallel",))
    est = _vmem_step_bytes(N, F, H, C, db)
    if est > (16 << 20):                 # only raise the scoped VMEM limit if needed
        _, vmem_cap = _tpu_topology()
        cp_kwargs["vmem_limit_bytes"] = int(min(2 * est, vmem_cap * 3 // 4))

    kernel = functools.partial(_sdn_kernel, db=db, H2=H2, H=H, Ht=Ht,
                               LPAD=LPAD, KH=KH)
    ds_pk, logits_pk, mi_pk = pl.pallas_call(
        kernel,
        grid=(S,),
        in_specs=in_specs,
        out_specs=out_specs,
        out_shape=out_shape,
        compiler_params=pltpu.CompilerParams(**cp_kwargs),
    )(features, di_features, packed["w1"], packed["w2"], packed["whead"],
      packed["wdi"], packed["wt2"], packed["rowparams"])

    # Layout plumbing back to the module's [num_domains, N, *] convention.
    ds = ds_pk.reshape(S, N, db, H).transpose(0, 2, 1, 3).reshape(D, N, H)
    logits = (logits_pk[:, :, :db * C].reshape(S, N, db, C)
              .transpose(0, 2, 1, 3).reshape(D, N, C))
    mi = mi_pk.reshape(D)
    return ds, logits, mi


# ----------------------------------------------------------------------------
# Parameter init (PyTorch convention: Linear weights are [out, in])
# ----------------------------------------------------------------------------
def init_params(key, feature_dim, hidden_dim, num_domains, num_classes):
    H2 = 2 * hidden_dim
    ks = jax.random.split(key, 12)
    n = lambda k, shp, s=0.05: s * jax.random.normal(k, shp, dtype=jnp.float32)
    return {
        "w1": n(ks[0], (num_domains, H2, feature_dim)),
        "b1": n(ks[1], (num_domains, 1, H2)),
        "g1": 1.0 + n(ks[10], (num_domains, 1, H2), 0.1),
        "be1": n(ks[11], (num_domains, 1, H2), 0.1),
        "w2": n(ks[2], (num_domains, hidden_dim, H2)),
        "b2": n(ks[3], (num_domains, 1, hidden_dim)),
        "g2": jnp.ones((num_domains, 1, hidden_dim), jnp.float32),
        "be2": jnp.zeros((num_domains, 1, hidden_dim), jnp.float32),
        "wc": n(ks[4], (num_domains, num_classes, hidden_dim)),
        "bc": n(ks[5], (num_domains, 1, num_classes)),
        "wt1": n(ks[6], (num_domains, hidden_dim, 2 * hidden_dim)),
        "bt1": n(ks[7], (num_domains, 1, hidden_dim)),
        "wt2": n(ks[8], (num_domains, 1, hidden_dim)),
        "bt2": n(ks[9], (num_domains, 1, 1)),
    }


# ----------------------------------------------------------------------------
# Pure-JAX reference mirroring the kernel's bf16-matmul / f32-accumulate math
# ----------------------------------------------------------------------------
def reference_forward(features, di_features, params):
    D = params["w1"].shape[0]
    H = di_features.shape[1]
    bf16 = jnp.bfloat16
    x_bf = features.astype(bf16)
    di_bf = di_features.astype(bf16)

    def mine(ds, d, shift):
        inp = jnp.concatenate([di_bf, ds.astype(bf16)], axis=-1)
        inp_m = jnp.concatenate(
            [di_bf, jnp.roll(ds, shift, axis=0).astype(bf16)], axis=-1)
        wt1 = params["wt1"][d].T.astype(bf16)
        bt1, wt2, bt2 = params["bt1"][d], params["wt2"][d], params["bt2"][d]
        tj = jnp.maximum(jnp.dot(inp, wt1, preferred_element_type=jnp.float32) + bt1, 0.0)
        tm = jnp.maximum(jnp.dot(inp_m, wt1, preferred_element_type=jnp.float32) + bt1, 0.0)
        Tj = jnp.sum(tj * wt2, axis=-1, keepdims=True) + bt2
        Tm = jnp.sum(tm * wt2, axis=-1, keepdims=True) + bt2
        m = jnp.max(Tm)
        return -(jnp.mean(Tj) - (m + jnp.log(jnp.mean(jnp.exp(Tm - m)))))

    ds_all, log_all, mi_p, mi_m = [], [], [], []
    for d in range(D):
        h = jnp.dot(x_bf, params["w1"][d].T.astype(bf16),
                    preferred_element_type=jnp.float32) + params["b1"][d]
        h = jnp.maximum(_batchnorm_train(h, params["g1"][d], params["be1"][d]), 0.0)
        z = jnp.dot(h.astype(bf16), params["w2"][d].T.astype(bf16),
                    preferred_element_type=jnp.float32) + params["b2"][d]
        ds = jnp.maximum(_batchnorm_train(z, params["g2"][d], params["be2"][d]), 0.0)
        ds_all.append(ds)
        log_all.append(jnp.dot(ds.astype(bf16), params["wc"][d].T.astype(bf16),
                               preferred_element_type=jnp.float32) + params["bc"][d])
        mi_p.append(mine(ds, d, +1))
        mi_m.append(mine(ds, d, -1))
    return (jnp.stack(ds_all), jnp.stack(log_all),
            jnp.stack(mi_p), jnp.stack(mi_m))


if __name__ == "__main__":
    key = jax.random.PRNGKey(0)

    def run_case(N, F, H, D, C, domains_per_step, subkey):
        k_feat, k_di, k_par = jax.random.split(subkey, 3)
        features = jax.random.normal(k_feat, (N, F), dtype=jnp.float32)
        di_features = jax.random.normal(k_di, (N, H), dtype=jnp.float32)
        params = init_params(k_par, F, H, D, C)

        db = (domains_per_step if domains_per_step is not None
              else _pick_domains_per_step(D, N, F, H, C))
        packed, meta = pack_params(params, db)       # one-time repack (hoisted)
        ds, logits, mi = sdn_forward(features, di_features, packed, meta)
        jax.block_until_ready((ds, logits, mi))

        ds_r, log_r, mi_p, mi_m = reference_forward(features, di_features, params)
        tol = dict(atol=2e-2, rtol=2e-2)
        assert ds.shape == (D, N, H) and logits.shape == (D, N, C) and mi.shape == (D,)
        assert jnp.allclose(ds, ds_r, **tol), "ds_features mismatch"
        assert jnp.allclose(logits, log_r, **tol), "mlp_output mismatch"
        # pltpu.roll direction vs jnp.roll is an implementation detail of the
        # deterministic shuffle stand-in; accept either direction.
        mi_ok = (bool(jnp.allclose(mi, mi_p, **tol))
                 or bool(jnp.allclose(mi, mi_m, **tol)))
        assert mi_ok, "mi_loss mismatch"
        assert bool(jnp.all(jnp.isfinite(mi))), "mi_loss not finite"

    k1, k2, k3 = jax.random.split(key, 3)
    # batch=8, feature_dim=32, hidden_dim=32, 2 domains, 4 classes (heuristic db)
    run_case(N=8, F=32, H=32, D=2, C=4, domains_per_step=None, subkey=k1)
    # fused multi-domain-per-step path: 4 domains, 2 per grid step
    run_case(N=8, F=64, H=32, D=4, C=4, domains_per_step=2, subkey=k2)
    # single-domain-per-step path (what a 2-TC chip's heuristic would pick)
    run_case(N=8, F=32, H=32, D=2, C=4, domains_per_step=1, subkey=k3)

    print("KERNEL_OK")
</pallas_src>

<mosaic_0001>
module attributes {stable_mosaic.version = 11 : i64} {
  func.func @_sdn_kernel(%arg0: i32, %arg1: memref<8x32xf32, #tpu.memory_space<vmem>>, %arg2: memref<8x32xf32, #tpu.memory_space<vmem>>, %arg3: memref<1x32x128xbf16, #tpu.memory_space<vmem>>, %arg4: memref<1x128x64xbf16, #tpu.memory_space<vmem>>, %arg5: memref<1x64x256xbf16, #tpu.memory_space<vmem>>, %arg6: memref<1x32x64xbf16, #tpu.memory_space<vmem>>, %arg7: memref<1x64x2xf32, #tpu.memory_space<vmem>>, %arg8: memref<1x8x256xf32, #tpu.memory_space<vmem>>, %arg9: memref<1x8x64xf32, #tpu.memory_space<vmem>>, %arg10: memref<1x8x128xf32, #tpu.memory_space<vmem>>, %arg11: memref<1x1x2xf32, #tpu.memory_space<vmem>>) attributes {dimension_semantics = [#tpu.dimension_semantics<parallel>], iteration_bounds = array<i64: 1>, scalar_prefetch = 0 : i64, scratch_operands = 0 : i64, tpu.core_type = #tpu.core_type<tc>, window_params = [{pipeline_mode = #tpu.pipeline_mode<synchronous>, transform_indices = @transform_0, window_bounds = array<i64: 8, 32>}, {pipeline_mode = #tpu.pipeline_mode<synchronous>, transform_indices = @transform_1, window_bounds = array<i64: 8, 32>}, {transform_indices = @transform_2, window_bounds = array<i64: 1, 32, 128>}, {transform_indices = @transform_3, window_bounds = array<i64: 1, 128, 64>}, {transform_indices = @transform_4, window_bounds = array<i64: 1, 64, 256>}, {transform_indices = @transform_5, window_bounds = array<i64: 1, 32, 64>}, {transform_indices = @transform_6, window_bounds = array<i64: 1, 64, 2>}, {transform_indices = @transform_7, window_bounds = array<i64: 1, 8, 256>}, {transform_indices = @transform_8, window_bounds = array<i64: 1, 8, 64>}, {transform_indices = @transform_9, window_bounds = array<i64: 1, 8, 128>}, {transform_indices = @transform_10, window_bounds = array<i64: 1, 1, 2>}]} {
    %c0 = arith.constant 0 : index
    %c0_0 = arith.constant 0 : index
    %0 = vector.load %arg1[%c0, %c0_0] : memref<8x32xf32, #tpu.memory_space<vmem>>, vector<8x32xf32>
    %1 = arith.truncf %0 : vector<8x32xf32> to vector<8x32xbf16>
    %c0_1 = arith.constant 0 : index
    %c0_2 = arith.constant 0 : index
    %2 = vector.load %arg2[%c0_1, %c0_2] : memref<8x32xf32, #tpu.memory_space<vmem>>, vector<8x32xf32>
    %3 = arith.truncf %2 : vector<8x32xf32> to vector<8x32xbf16>
    %c0_3 = arith.constant 0 : index
    %c0_4 = arith.constant 0 : index
    %c0_5 = arith.constant 0 : index
    %4 = vector.load %arg8[%c0_3, %c0_4, %c0_5] : memref<1x8x256xf32, #tpu.memory_space<vmem>>, vector<1x8x256xf32>
    %5 = vector.shape_cast %4 : vector<1x8x256xf32> to vector<8x256xf32>
    %6 = vector.extract_strided_slice %5 {offsets = [0, 0], sizes = [1, 128], strides = [1, 1]} : vector<8x256xf32> to vector<1x128xf32>
    %7 = vector.extract_strided_slice %5 {offsets = [1, 0], sizes = [1, 128], strides = [1, 1]} : vector<8x256xf32> to vector<1x128xf32>
    %8 = vector.extract_strided_slice %5 {offsets = [2, 0], sizes = [1, 128], strides = [1, 1]} : vector<8x256xf32> to vector<1x128xf32>
    %9 = vector.extract_strided_slice %5 {offsets = [3, 0], sizes = [1, 64], strides = [1, 1]} : vector<8x256xf32> to vector<1x64xf32>
    %10 = vector.extract_strided_slice %5 {offsets = [4, 0], sizes = [1, 64], strides = [1, 1]} : vector<8x256xf32> to vector<1x64xf32>
    %11 = vector.extract_strided_slice %5 {offsets = [5, 0], sizes = [1, 64], strides = [1, 1]} : vector<8x256xf32> to vector<1x64xf32>
    %12 = vector.extract_strided_slice %5 {offsets = [6, 0], sizes = [1, 256], strides = [1, 1]} : vector<8x256xf32> to vector<1x256xf32>
    %13 = vector.extract_strided_slice %5 {offsets = [7, 0], sizes = [1, 2], strides = [1, 1]} : vector<8x256xf32> to vector<1x2xf32>
    %c0_6 = arith.constant 0 : index
    %c0_7 = arith.constant 0 : index
    %c0_8 = arith.constant 0 : index
    %14 = vector.load %arg3[%c0_6, %c0_7, %c0_8] : memref<1x32x128xbf16, #tpu.memory_space<vmem>>, vector<1x32x128xbf16>
    %15 = vector.shape_cast %14 : vector<1x32x128xbf16> to vector<32x128xbf16>
    %cst = arith.constant dense<0.000000e+00> : vector<8x128xf32>
    %16 = tpu.matmul %1, %15, %cst {dimension_numbers = #tpu.dot_dimension_numbers<[1], [0], [0], [1], [0, 0, 1, 1], [], []>} : vector<8x32xbf16>, vector<32x128xbf16>, vector<8x128xf32> -> vector<8x128xf32>
    %17 = vector.broadcast %6 : vector<1x128xf32> to vector<8x128xf32>
    %18 = arith.addf %16, %17 : vector<8x128xf32>
    %cst_9 = arith.constant dense<0.000000e+00> : vector<128xf32>
    %19 = vector.multi_reduction <add>, %18, %cst_9 [0] : vector<8x128xf32> to vector<128xf32>
    %20 = vector.shape_cast %19 : vector<128xf32> to vector<1x128xf32>
    %cst_10 = arith.constant 8.000000e+00 : f32
    %21 = vector.broadcast %cst_10 : f32 to vector<1x128xf32>
    %22 = arith.divf %20, %21 : vector<1x128xf32>
    %23 = vector.broadcast %22 : vector<1x128xf32> to vector<8x128xf32>
    %24 = arith.subf %18, %23 : vector<8x128xf32>
    %25 = arith.mulf %24, %24 : vector<8x128xf32>
    %cst_11 = arith.constant dense<0.000000e+00> : vector<128xf32>
    %26 = vector.multi_reduction <add>, %25, %cst_11 [0] : vector<8x128xf32> to vector<128xf32>
    %27 = vector.shape_cast %26 : vector<128xf32> to vector<1x128xf32>
    %cst_12 = arith.constant 8.000000e+00 : f32
    %28 = vector.broadcast %cst_12 : f32 to vector<1x128xf32>
    %29 = arith.divf %27, %28 : vector<1x128xf32>
    %30 = vector.broadcast %22 : vector<1x128xf32> to vector<8x128xf32>
    %31 = arith.subf %18, %30 : vector<8x128xf32>
    %cst_13 = arith.constant 9.99999974E-6 : f32
    %32 = vector.broadcast %cst_13 : f32 to vector<1x128xf32>
    %33 = arith.addf %29, %32 : vector<1x128xf32>
    %34 = math.rsqrt %33 : vector<1x128xf32>
    %35 = vector.broadcast %34 : vector<1x128xf32> to vector<8x128xf32>
    %36 = arith.mulf %31, %35 : vector<8x128xf32>
    %37 = vector.broadcast %7 : vector<1x128xf32> to vector<8x128xf32>
    %38 = arith.mulf %36, %37 : vector<8x128xf32>
    %39 = vector.broadcast %8 : vector<1x128xf32> to vector<8x128xf32>
    %40 = arith.addf %38, %39 : vector<8x128xf32>
    %cst_14 = arith.constant 0.000000e+00 : f32
    %41 = vector.broadcast %cst_14 : f32 to vector<8x128xf32>
    %42 = arith.maximumf %40, %41 : vector<8x128xf32>
    %43 = arith.truncf %42 : vector<8x128xf32> to vector<8x128xbf16>
    %c0_15 = arith.constant 0 : index
    %c0_16 = arith.constant 0 : index
    %c0_17 = arith.constant 0 : index
    %44 = vector.load %arg4[%c0_15, %c0_16, %c0_17] : memref<1x128x64xbf16, #tpu.memory_space<vmem>>, vector<1x128x64xbf16>
    %45 = vector.shape_cast %44 : vector<1x128x64xbf16> to vector<128x64xbf16>
    %cst_18 = arith.constant dense<0.000000e+00> : vector<8x64xf32>
    %46 = tpu.matmul %43, %45, %cst_18 {dimension_numbers = #tpu.dot_dimension_numbers<[1], [0], [0], [1], [0, 0, 1, 1], [], []>} : vector<8x128xbf16>, vector<128x64xbf16>, vector<8x64xf32> -> vector<8x64xf32>
    %47 = vector.broadcast %9 : vector<1x64xf32> to vector<8x64xf32>
    %48 = arith.addf %46, %47 : vector<8x64xf32>
    %cst_19 = arith.constant dense<0.000000e+00> : vector<64xf32>
    %49 = vector.multi_reduction <add>, %48, %cst_19 [0] : vector<8x64xf32> to vector<64xf32>
    %50 = vector.shape_cast %49 : vector<64xf32> to vector<1x64xf32>
    %cst_20 = arith.constant 8.000000e+00 : f32
    %51 = vector.broadcast %cst_20 : f32 to vector<1x64xf32>
    %52 = arith.divf %50, %51 : vector<1x64xf32>
    %53 = vector.broadcast %52 : vector<1x64xf32> to vector<8x64xf32>
    %54 = arith.subf %48, %53 : vector<8x64xf32>
    %55 = arith.mulf %54, %54 : vector<8x64xf32>
    %cst_21 = arith.constant dense<0.000000e+00> : vector<64xf32>
    %56 = vector.multi_reduction <add>, %55, %cst_21 [0] : vector<8x64xf32> to vector<64xf32>
    %57 = vector.shape_cast %56 : vector<64xf32> to vector<1x64xf32>
    %cst_22 = arith.constant 8.000000e+00 : f32
    %58 = vector.broadcast %cst_22 : f32 to vector<1x64xf32>
    %59 = arith.divf %57, %58 : vector<1x64xf32>
    %60 = vector.broadcast %52 : vector<1x64xf32> to vector<8x64xf32>
    %61 = arith.subf %48, %60 : vector<8x64xf32>
    %cst_23 = arith.constant 9.99999974E-6 : f32
    %62 = vector.broadcast %cst_23 : f32 to vector<1x64xf32>
    %63 = arith.addf %59, %62 : vector<1x64xf32>
    %64 = math.rsqrt %63 : vector<1x64xf32>
    %65 = vector.broadcast %64 : vector<1x64xf32> to vector<8x64xf32>
    %66 = arith.mulf %61, %65 : vector<8x64xf32>
    %67 = vector.broadcast %10 : vector<1x64xf32> to vector<8x64xf32>
    %68 = arith.mulf %66, %67 : vector<8x64xf32>
    %69 = vector.broadcast %11 : vector<1x64xf32> to vector<8x64xf32>
    %70 = arith.addf %68, %69 : vector<8x64xf32>
    %cst_24 = arith.constant 0.000000e+00 : f32
    %71 = vector.broadcast %cst_24 : f32 to vector<8x64xf32>
    %72 = arith.maximumf %70, %71 : vector<8x64xf32>
    %c0_25 = arith.constant 0 : index
    %c0_26 = arith.constant 0 : index
    %c0_27 = arith.constant 0 : index
    %73 = vector.load %arg9[%c0_25, %c0_26, %c0_27] : memref<1x8x64xf32, #tpu.memory_space<vmem>>, vector<1x8x64xf32>
    %74 = vector.shape_cast %73 : vector<1x8x64xf32> to vector<8x64xf32>
    %75 = vector.shape_cast %72 : vector<8x64xf32> to vector<1x8x64xf32>
    tpu.vector_store %arg9[%c0_25, %c0_26, %c0_27], %75 {strides = array<i32>} : memref<1x8x64xf32, #tpu.memory_space<vmem>>, vector<1x8x64xf32>,
    %76 = arith.truncf %72 : vector<8x64xf32> to vector<8x64xbf16>
    %c0_28 = arith.constant 0 : index
    %c0_29 = arith.constant 0 : index
    %c0_30 = arith.constant 0 : index
    %77 = vector.load %arg5[%c0_28, %c0_29, %c0_30] : memref<1x64x256xbf16, #tpu.memory_space<vmem>>, vector<1x64x256xbf16>
    %78 = vector.shape_cast %77 : vector<1x64x256xbf16> to vector<64x256xbf16>
    %cst_31 = arith.constant dense<0.000000e+00> : vector<8x256xf32>
    %79 = tpu.matmul %76, %78, %cst_31 {dimension_numbers = #tpu.dot_dimension_numbers<[1], [0], [0], [1], [0, 0, 1, 1], [], []>} : vector<8x64xbf16>, vector<64x256xbf16>, vector<8x256xf32> -> vector<8x256xf32>
    %80 = vector.broadcast %12 : vector<1x256xf32> to vector<8x256xf32>
    %81 = arith.addf %79, %80 : vector<8x256xf32>
    %82 = vector.extract_strided_slice %81 {offsets = [0, 0], sizes = [8, 128], strides = [1, 1]} : vector<8x256xf32> to vector<8x128xf32>
    %c0_32 = arith.constant 0 : index
    %c0_33 = arith.constant 0 : index
    %c0_34 = arith.constant 0 : index
    %83 = vector.load %arg10[%c0_32, %c0_33, %c0_34] : memref<1x8x128xf32, #tpu.memory_space<vmem>>, vector<1x8x128xf32>
    %84 = vector.shape_cast %83 : vector<1x8x128xf32> to vector<8x128xf32>
    %85 = vector.shape_cast %82 : vector<8x128xf32> to vector<1x8x128xf32>
    tpu.vector_store %arg10[%c0_32, %c0_33, %c0_34], %85 {strides = array<i32>} : memref<1x8x128xf32, #tpu.memory_space<vmem>>, vector<1x8x128xf32>,
    %86 = vector.extract_strided_slice %81 {offsets = [0, 128], sizes = [8, 64], strides = [1, 1]} : vector<8x256xf32> to vector<8x64xf32>
    %c0_35 = arith.constant 0 : index
    %c0_36 = arith.constant 0 : index
    %c0_37 = arith.constant 0 : index
    %87 = vector.load %arg6[%c0_35, %c0_36, %c0_37] : memref<1x32x64xbf16, #tpu.memory_space<vmem>>, vector<1x32x64xbf16>
    %88 = vector.shape_cast %87 : vector<1x32x64xbf16> to vector<32x64xbf16>
    %cst_38 = arith.constant dense<0.000000e+00> : vector<8x64xf32>
    %89 = tpu.matmul %3, %88, %cst_38 {dimension_numbers = #tpu.dot_dimension_numbers<[1], [0], [0], [1], [0, 0, 1, 1], [], []>} : vector<8x32xbf16>, vector<32x64xbf16>, vector<8x64xf32> -> vector<8x64xf32>
    %90 = arith.addf %89, %86 : vector<8x64xf32>
    %cst_39 = arith.constant 0.000000e+00 : f32
    %91 = vector.broadcast %cst_39 : f32 to vector<8x64xf32>
    %92 = arith.maximumf %90, %91 : vector<8x64xf32>
    %c1_i32 = arith.constant 1 : i32
    %93 = tpu.dynamic_rotate %86 by %c1_i32 dim 0 : vector<8x64xf32>, i32 -> vector<8x64xf32>
    %94 = arith.addf %89, %93 : vector<8x64xf32>
    %cst_40 = arith.constant 0.000000e+00 : f32
    %95 = vector.broadcast %cst_40 : f32 to vector<8x64xf32>
    %96 = arith.maximumf %94, %95 : vector<8x64xf32>
    %c0_41 = arith.constant 0 : index
    %c0_42 = arith.constant 0 : index
    %c0_43 = arith.constant 0 : index
    %97 = vector.load %arg7[%c0_41, %c0_42, %c0_43] : memref<1x64x2xf32, #tpu.memory_space<vmem>>, vector<1x64x2xf32>
    %98 = vector.shape_cast %97 : vector<1x64x2xf32> to vector<64x2xf32>
    %cst_44 = arith.constant dense<0.000000e+00> : vector<8x2xf32>
    %99 = tpu.matmul %92, %98, %cst_44 {dimension_numbers = #tpu.dot_dimension_numbers<[1], [0], [0], [1], [0, 0, 1, 1], [], []>} : vector<8x64xf32>, vector<64x2xf32>, vector<8x2xf32> -> vector<8x2xf32>
    %100 = vector.broadcast %13 : vector<1x2xf32> to vector<8x2xf32>
    %101 = arith.addf %99, %100 : vector<8x2xf32>
    %cst_45 = arith.constant dense<0.000000e+00> : vector<8x2xf32>
    %102 = tpu.matmul %96, %98, %cst_45 {dimension_numbers = #tpu.dot_dimension_numbers<[1], [0], [0], [1], [0, 0, 1, 1], [], []>} : vector<8x64xf32>, vector<64x2xf32>, vector<8x2xf32> -> vector<8x2xf32>
    %103 = vector.broadcast %13 : vector<1x2xf32> to vector<8x2xf32>
    %104 = arith.addf %102, %103 : vector<8x2xf32>
    %cst_46 = arith.constant dense<0.000000e+00> : vector<2xf32>
    %105 = vector.multi_reduction <add>, %101, %cst_46 [0] : vector<8x2xf32> to vector<2xf32>
    %106 = vector.shape_cast %105 : vector<2xf32> to vector<1x2xf32>
    %cst_47 = arith.constant 8.000000e+00 : f32
    %107 = vector.broadcast %cst_47 : f32 to vector<1x2xf32>
    %108 = arith.divf %106, %107 : vector<1x2xf32>
    %cst_48 = arith.constant dense<0xFF800000> : vector<2xf32>
    %109 = vector.multi_reduction <maximumf>, %104, %cst_48 [0] : vector<8x2xf32> to vector<2xf32>
    %110 = vector.shape_cast %109 : vector<2xf32> to vector<1x2xf32>
    %111 = vector.broadcast %110 : vector<1x2xf32> to vector<8x2xf32>
    %112 = arith.subf %104, %111 : vector<8x2xf32>
    %113 = math.exp %112 : vector<8x2xf32>
    %cst_49 = arith.constant dense<0.000000e+00> : vector<2xf32>
    %114 = vector.multi_reduction <add>, %113, %cst_49 [0] : vector<8x2xf32> to vector<2xf32>
    %115 = vector.shape_cast %114 : vector<2xf32> to vector<1x2xf32>
    %cst_50 = arith.constant 8.000000e+00 : f32
    %116 = vector.broadcast %cst_50 : f32 to vector<1x2xf32>
    %117 = arith.divf %115, %116 : vector<1x2xf32>
    %118 = math.log %117 : vector<1x2xf32>
    %119 = arith.addf %110, %118 : vector<1x2xf32>
    %120 = arith.subf %119, %108 : vector<1x2xf32>
    %c0_51 = arith.constant 0 : index
    %c0_52 = arith.constant 0 : index
    %c0_53 = arith.constant 0 : index
    %121 = vector.load %arg11[%c0_51, %c0_52, %c0_53] : memref<1x1x2xf32, #tpu.memory_space<vmem>>, vector<1x1x2xf32>
    %122 = vector.shape_cast %121 : vector<1x1x2xf32> to vector<1x2xf32>
    %123 = vector.shape_cast %120 : vector<1x2xf32> to vector<1x1x2xf32>
    tpu.vector_store %arg11[%c0_51, %c0_52, %c0_53], %123 {strides = array<i32>} : memref<1x1x2xf32, #tpu.memory_space<vmem>>, vector<1x1x2xf32>,
    return
  }
  func.func @transform_0(%arg0: i32) -> (i32, i32) {
    %c0_i32 = arith.constant 0 : i32
    %c0_i32_0 = arith.constant 0 : i32
    %c0_i32_1 = arith.constant 0 : i32
    return %c0_i32, %c0_i32_0 : i32, i32
  }
  func.func @transform_1(%arg0: i32) -> (i32, i32) {
    %c0_i32 = arith.constant 0 : i32
    %c0_i32_0 = arith.constant 0 : i32
    %c0_i32_1 = arith.constant 0 : i32
    return %c0_i32, %c0_i32_0 : i32, i32
  }
  func.func @transform_2(%arg0: i32) -> (i32, i32, i32) {
    %c0_i32 = arith.constant 0 : i32
    %c0_i32_0 = arith.constant 0 : i32
    %c0_i32_1 = arith.constant 0 : i32
    return %arg0, %c0_i32, %c0_i32_0 : i32, i32, i32
  }
  func.func @transform_3(%arg0: i32) -> (i32, i32, i32) {
    %c0_i32 = arith.constant 0 : i32
    %c0_i32_0 = arith.constant 0 : i32
    %c0_i32_1 = arith.constant 0 : i32
    return %arg0, %c0_i32, %c0_i32_0 : i32, i32, i32
  }
  func.func @transform_4(%arg0: i32) -> (i32, i32, i32) {
    %c0_i32 = arith.constant 0 : i32
    %c0_i32_0 = arith.constant 0 : i32
    %c0_i32_1 = arith.constant 0 : i32
    return %arg0, %c0_i32, %c0_i32_0 : i32, i32, i32
  }
  func.func @transform_5(%arg0: i32) -> (i32, i32, i32) {
    %c0_i32 = arith.constant 0 : i32
    %c0_i32_0 = arith.constant 0 : i32
    %c0_i32_1 = arith.constant 0 : i32
    return %arg0, %c0_i32, %c0_i32_0 : i32, i32, i32
  }
  func.func @transform_6(%arg0: i32) -> (i32, i32, i32) {
    %c0_i32 = arith.constant 0 : i32
    %c0_i32_0 = arith.constant 0 : i32
    %c0_i32_1 = arith.constant 0 : i32
    return %arg0, %c0_i32, %c0_i32_0 : i32, i32, i32
  }
  func.func @transform_7(%arg0: i32) -> (i32, i32, i32) {
    %c0_i32 = arith.constant 0 : i32
    %c0_i32_0 = arith.constant 0 : i32
    %c0_i32_1 = arith.constant 0 : i32
    return %arg0, %c0_i32, %c0_i32_0 : i32, i32, i32
  }
  func.func @transform_8(%arg0: i32) -> (i32, i32, i32) {
    %c0_i32 = arith.constant 0 : i32
    %c0_i32_0 = arith.constant 0 : i32
    %c0_i32_1 = arith.constant 0 : i32
    return %arg0, %c0_i32, %c0_i32_0 : i32, i32, i32
  }
  func.func @transform_9(%arg0: i32) -> (i32, i32, i32) {
    %c0_i32 = arith.constant 0 : i32
    %c0_i32_0 = arith.constant 0 : i32
    %c0_i32_1 = arith.constant 0 : i32
    return %arg0, %c0_i32, %c0_i32_0 : i32, i32, i32
  }
  func.func @transform_10(%arg0: i32) -> (i32, i32, i32) {
    %c0_i32 = arith.constant 0 : i32
    %c0_i32_0 = arith.constant 0 : i32
    %c0_i32_1 = arith.constant 0 : i32
    return %arg0, %c0_i32, %c0_i32_0 : i32, i32, i32
  }
}

</mosaic_0001>

<bundles_post_ra>
// kernel: tpu_custom_call.1
= control target key start
LH: loop header
LB: loop body
LE: loop exit
PB: predicated region body
PF: predicated region fallthrough
CT: control target
= control target key end

     0   :  { %16 = vsyncpa [#allocation3], 0  ;;  %v942_v1 = vmov 0.0   ;;  %vm943_vm0 = vmmov 0   ;;  %vm61_vm1 = vcmask 261120   ;;  %s1197_s0 = inlined_call_operand.vmem [shape: f32[8,32], index: 0, kind: input, shape index: {}]   ;;  %s1198_s1 = inlined_call_operand.vmem [shape: f32[8,32], index: 1, kind: input, shape index: {}]   ;;  %s1199_s2 = inlined_call_operand.vmem [shape: bf16[1,32,128], index: 2, kind: input, shape index: {}]   ;;  %s1200_s3 = inlined_call_operand.vmem [shape: bf16[1,128,64], index: 3, kind: input, shape index: {}]   ;;  %s1201_s4 = inlined_call_operand.vmem [shape: bf16[1,64,256], index: 4, kind: input, shape index: {}]   ;;  %s1202_s5 = inlined_call_operand.vmem [shape: bf16[1,32,64], index: 5, kind: input, shape index: {}]   ;;  %s1203_s6 = inlined_call_operand.vmem [shape: f32[1,64,2], index: 6, kind: input, shape index: {}]   ;;  %s1204_s7 = inlined_call_operand.vmem [shape: f32[1,8,256], index: 7, kind: input, shape index: {}]   ;;  %s1205_s8 = inlined_call_operand.hbm [shape: f32[1,8,64], index: 8, kind: output, shape index: {0}]   ;;  %s1206_s9 = inlined_call_operand.hbm [shape: f32[1,8,128], index: 9, kind: output, shape index: {1}]   ;;  %s1207_s10 = inlined_call_operand.hbm [shape: f32[1,1,2], index: 10, kind: output, shape index: {2}]  }
   0x1   :  { %v840_v0 = vld [vmem:[%s1199_s2] sm:$0xff]   ;;  %735 = vmatprep.subr.bf16.mxu0 %v942_v1  ;;  %743 = vmatprep.subr.bf16.mxu1 %v942_v1  ;;  %v841_v2 = vld [vmem:[%s1199_s2 + $0x8] sm:$0xff]  }
   0x2   :  { %736 = vmatpush3.bf16.msra.mxu0 %v840_v0  ;;  %739 = vmatprep.mubr.msk.bf16.mxu0 %vm943_vm0, %v942_v1  ;;  %v35_v3 = vld [vmem:[%s1197_s0] sm:$0xff] }
   0x3   :  { %737 = vmatprep.subr.bf16.mxu0 %v942_v1  ;;  %759 = vmatprep.mubr.msk.bf16.mxu1 %vm943_vm0, %v942_v1  ;;  %v36_v4 = vpack.c.bf16 %v35_v3, %v35_v3 }
   0x6   :  { %738 = vmatpush3.bf16.msra.mxu0 %v841_v2 }
   0x9   :  { %740 = vmatmul.mubr.msk.bf16.vlgmr.msra.gmra.mrb[0].mxu0 %vm61_vm1, %v36_v4 }
   0xa   :  { %17 = vsyncpa [#allocation5], 0  ;;  %v842_v5 = vld [vmem:[%s1200_s3] sm:$0xff]   ;;  %v843_v6 = vld [vmem:[%s1200_s3 + $0x8] sm:$0xff]   ;;  %v45_v13 = vlaneseq  ;;  %v944_v58 = vmov 0   ;;  %v945_v61 = vmov 0.0|0.0  }
   0xb   :  { %744 = vmatpush3.bf16.msra.mxu1 %v842_v5  ;;  %v844_v7 = vld [vmem:[%s1200_s3 + $0x10] sm:$0xff]   ;;  %v845_v8 = vld [vmem:[%s1200_s3 + $0x18] sm:$0xff]   ;;  %v846_v9 = vld [vmem:[%s1200_s3 + $0x20] sm:$0xff]   ;;  %371 = vmatprep.mubr.bf16.mxu0 %v944_v58  ;;  %vm245_vm2 = vcmask 523264   ;;  %s947_s26 = smov [#allocation2]  }
   0xc   :  { %745 = vmatprep.subr.bf16.mxu1 %v942_v1  ;;  %v847_v10 = vld [vmem:[%s1200_s3 + $0x28] sm:$0xff]   ;;  %v848_v11 = vld [vmem:[%s1200_s3 + $0x30] sm:$0xff]   ;;  %v849_v12 = vld [vmem:[%s1200_s3 + $0x38] sm:$0xff]   ;;  %v1052_v14 = vshrl.u32 %v45_v13, 7  ;;  %s642_s27 = sshll.u32 %s947_s26, 4  ;;  %s643_s27 = int_to_ptr.vmem [resolvable:$true] %s642_s27 }
   0xd   :  { %v1058_v16 = vld [vmem:[%s1204_s7] sm:$0xff]  ;;  %v855_v52 = vld [vmem:[%s1201_s4 + $0x14] ss:$8 sps:$4 sm:$0xff]   ;;  %v853_v53 = vld [vmem:[%s1201_s4 + $0x10] ss:$8 sps:$4 sm:$0xff]  }
   0xe   :  { %v47_v15 = vsub.s32 0, %v1052_v14  ;;  %v127_v40 = vsub.s32 1, %v1052_v14  ;;  %v132_v41 = vsub.s32 2, %v1052_v14  ;;  %v852_v50 = vld [vmem:[%s1201_s4 + $0x4] ss:$8 sps:$4 sm:$0xff]   ;;  %v155_v63 = vsub.s32 3, %v1052_v14 }
   0xf   :  { %746 = vmatpush3.bf16.msra.mxu1 %v843_v6  ;;  %v850_v51 = vld [vmem:[%s1201_s4] ss:$8 sps:$4 sm:$0xff]   ;;  %339 = vmatprep.subr.bf16.mxu0 %v852_v50  ;;  %v858_v54 = vld [vmem:[%s1201_s4 + $0x24] ss:$8 sps:$4 sm:$0xff]   ;;  %v861_v56 = vld [vmem:[%s1201_s4 + $0x34] ss:$8 sps:$4 sm:$0xff]  }
  0x10   :  { %747 = vmatprep.subr.bf16.mxu1 %v942_v1  ;;  %v48_v17 = vrot.slane %v1058_v16, %v47_v15  ;;  %v128_v42 = vrot.slane %v1058_v16, %v127_v40  ;;  %v133_v45 = vrot.slane %v1058_v16, %v132_v41  ;;  %340 = vmatpush1.bf16.msra.mxu0 %v850_v51  ;;  %v856_v55 = vld [vmem:[%s1201_s4 + $0x20] ss:$8 sps:$4 sm:$0xff]   ;;  %v859_v57 = vld [vmem:[%s1201_s4 + $0x30] ss:$8 sps:$4 sm:$0xff]   ;;  %v290_v50 = vsub.s32 6, %v1052_v14 }
  0x11   :  { %341 = vmatprep.subr.bf16.mxu0 %v855_v52  ;;  %v445_v59 = vld [vmem:[%s1203_s6] sm:$0xff]  ;;  %v446_v60 = vld [vmem:[%s1203_s6 + $0x8] sm:$0xff]  ;;  %v156_v0 = vrot.slane %v1058_v16, %v155_v63 }
  0x12   :  { %v810_v62 = vpack.c.bf16 %v446_v60, %v445_v59  ;;  %v37_v40 = vld [vmem:[%s1198_s1] sm:$0xff]  ;;  %v40_v51 = vld [vmem:[%s1204_s7 + $0x8] sm:$0xff]  ;;  %v291_v52 = vrot.slane %v1058_v16, %v290_v50 }
  0x13   :  { %748 = vmatpush3.bf16.msra.mxu1 %v844_v7  ;;  %v38_v41 = vpack.c.bf16 %v37_v40, %v37_v40 }
  0x14   :  { %749 = vmatprep.subr.bf16.mxu1 %v942_v1  ;;  %342 = vmatpush1.bf16.msra.mxu0 %v853_v53  ;;  %v295_v53 = vrot.slane %v40_v51, %v290_v50 }
  0x15   :  { %343 = vmatprep.subr.bf16.mxu0 %v858_v54 }
  0x17   :  { %750 = vmatpush3.bf16.msra.mxu1 %v845_v8 }
  0x18   :  { %751 = vmatprep.subr.bf16.mxu1 %v942_v1  ;;  %344 = vmatpush1.bf16.msra.mxu0 %v856_v55 }
  0x19   :  { %345 = vmatprep.subr.bf16.mxu0 %v861_v56 }
  0x1b   :  { %752 = vmatpush3.bf16.msra.mxu1 %v846_v9 }
  0x1c   :  { %753 = vmatprep.subr.bf16.mxu1 %v942_v1  ;;  %346 = vmatpush1.bf16.msra.mxu0 %v859_v57 }
  0x1d   :  { %763 = vmatprep.subr.bf16.mxu0 %v942_v1 }
  0x1f   :  { %754 = vmatpush3.bf16.msra.mxu1 %v847_v10 }
  0x20   :  { %755 = vmatprep.subr.bf16.mxu1 %v942_v1 }
  0x23   :  { %756 = vmatpush3.bf16.msra.mxu1 %v848_v11 }
  0x24   :  { %757 = vmatprep.subr.bf16.mxu1 %v942_v1 }
  0x27   :  { %758 = vmatpush3.bf16.msra.mxu1 %v849_v12 }
  0x28   :  { %821 = vmatprep.subr.bf16.mxu1 %v945_v61 }
  0xdc   :  { %v99_v18 = vpop.f32.mrb[0].mxu0 }
  0xdd   :  { %v100_v19 = vadd.f32 %v99_v18, %v48_v17  ;;  %v741_v20 = vpop.f32.mrb[1].mxu0 }
  0xde   :  { %v102_v21 = vpop.f32.mrb[2].mxu0 }
  0xdf   :  { %v105_v22 = vrot.slane %v100_v19, 4  ;;  %v742_v23 = vpop.f32.mrb[3].mxu0 }
  0xe1   :  { %v106_v24 = vadd.f32 %v105_v22, %v100_v19 }
  0xe3   :  { %v107_v25 = vrot.slane %v106_v24, 2 }
  0xe5   :  { %v108_v26 = vadd.f32 %v107_v25, %v106_v24 }
  0xe7   :  { %v109_v27 = vrot.slane %v108_v26, 1 }
  0xe9   :  { %v110_v28 = vadd.f32 %v109_v27, %v108_v26 }
  0xeb   :  { %v112_v29 = vmul.f32 0.125, %v110_v28  ;;  %v269_v28 = vsub.s32 4, %v1052_v14 }
  0xed   :  { %v113_v30 = vsub.f32 %v100_v19, %v112_v29  ;;  %v274_v29 = vsub.s32 5, %v1052_v14 }
  0xef   :  { %v114_v31 = vmul.f32 %v113_v30, %v113_v30 }
  0xf1   :  { %v115_v32 = vrot.slane %v114_v31, 4 }
  0xf3   :  { %v116_v33 = vadd.f32 %v115_v32, %v114_v31 }
  0xf5   :  { %v117_v34 = vrot.slane %v116_v33, 2 }
  0xf7   :  { %v118_v35 = vadd.f32 %v117_v34, %v116_v33  ;;  %v275_v33 = vrot.slane %v1058_v16, %v274_v29 }
  0xf9   :  { %v119_v36 = vrot.slane %v118_v35, 1 }
  0xfb   :  { %v120_v37 = vadd.f32 %v119_v36, %v118_v35 }
  0xfd   :  { %v121_v38 = vmul.f32 0.125, %v120_v37  ;;  %v862_v37 = vld [vmem:[%s1202_s5] sm:$0xff]  }
  0xff   :  { %v122_v39 = vadd.f32 1e-05, %v121_v38 }
 0x101   :  { %864 = vrsqrt.f32 %v122_v39  ;;  %v863_v39 = vld [vmem:[%s1202_s5 + $0x8] sm:$0xff]  }
 0x10b   :  { %v865_v43 = vpop.eup %864 }
 0x10c   :  { %v124_v44 = vmul.f32 %v865_v43, %v113_v30  ;;  %v270_v30 = vrot.slane %v1058_v16, %v269_v28  ;;  %v448_v43 = vld [vmem:[%s1203_s6 + $0x18] sm:$0xff] }
 0x10e   :  { %v129_v46 = vmul.f32 %v128_v42, %v124_v44  ;;  %v447_v42 = vld [vmem:[%s1203_s6 + $0x10] sm:$0xff] }
 0x10f   :  { %v813_v44 = vpack.c.bf16 %v448_v43, %v447_v42 }
 0x110   :  { %v134_v47 = vadd.f32 %v133_v45, %v129_v46  ;;  %v450_v45 = vld [vmem:[%s1203_s6 + $0x28] sm:$0xff] }
 0x112   :  { %v135_v48 = vmax.f32 %v134_v47, 0.0  ;;  %v451_v47 = vld [vmem:[%s1203_s6 + $0x30] sm:$0xff] }
 0x114   :  { %v136_v49 = vpack.c.bf16 %v135_v48, %v135_v48  ;;  %v452_v48 = vld [vmem:[%s1203_s6 + $0x38] sm:$0xff] }
 0x116   :  { %760 = vmatmul.mubr.bf16.vlgmr.msra.gmra.mrb[0].mxu1 %v136_v49  ;;  %v819_v49 = vpack.c.bf16 %v452_v48, %v451_v47 }
 0x117   :  { %806 = vmatprep.mubr.msk.f32.mxu1 %vm943_vm0, %v942_v1  ;;  %823 = vmatpush3.bf16.msra.mxu1 %v810_v62 }
 0x118   :  { %824 = vmatprep.subr.bf16.mxu1 %v945_v61 }
 0x11b   :  { %826 = vmatpush3.bf16.msra.mxu1 %v813_v44 }
 0x11c   :  { %827 = vmatprep.subr.bf16.mxu1 %v945_v61 }
 0x1e9   :  { %v239_v2 = vpop.f32.mrb[0].mxu1 }
 0x1ea   :  { %v240_v3 = vadd.f32 %v239_v2, %v156_v0  ;;  %v761_v4 = vpop.f32.mrb[1].mxu1 }
 0x1eb   :  { %v242_v5 = vpop.f32.mrb[2].mxu1 }
 0x1ec   :  { %v246_v6 = vsel %vm245_vm2, %v240_v3, 0.0  ;;  %v762_v7 = vpop.f32.mrb[3].mxu1 }
 0x1ed   :  { %v247_v8 = vrot.slane %v246_v6, 4 }
 0x1ef   :  { %v248_v9 = vadd.f32 %v247_v8, %v246_v6 }
 0x1f1   :  { %v249_v10 = vrot.slane %v248_v9, 2 }
 0x1f3   :  { %v250_v11 = vadd.f32 %v249_v10, %v248_v9 }
 0x1f5   :  { %v251_v12 = vrot.slane %v250_v11, 1 }
 0x1f7   :  { %v252_v13 = vadd.f32 %v251_v12, %v250_v11 }
 0x1f9   :  { %v253_v15 = vmul.f32 0.125, %v252_v13 }
 0x1fb   :  { %v254_v17 = vsub.f32 %v240_v3, %v253_v15 }
 0x1fd   :  { %v255_v18 = vmul.f32 %v254_v17, %v254_v17 }
 0x1ff   :  { %v256_v19 = vsel %vm245_vm2, %v255_v18, 0.0 }
 0x200   :  { %v257_v20 = vrot.slane %v256_v19, 4 }
 0x202   :  { %v258_v21 = vadd.f32 %v257_v20, %v256_v19 }
 0x204   :  { %v259_v22 = vrot.slane %v258_v21, 2 }
 0x206   :  { %v260_v23 = vadd.f32 %v259_v22, %v258_v21 }
 0x208   :  { %v261_v24 = vrot.slane %v260_v23, 1 }
 0x20a   :  { %v262_v25 = vadd.f32 %v261_v24, %v260_v23 }
 0x20c   :  { %v263_v26 = vmul.f32 0.125, %v262_v25 }
 0x20e   :  { %v264_v27 = vadd.f32 1e-05, %v263_v26 }
 0x210   :  { %866 = vrsqrt.f32 %v264_v27 }
 0x21a   :  { %v867_v31 = vpop.eup %866 }
 0x21b   :  { %v266_v32 = vmul.f32 %v867_v31, %v254_v17 }
 0x21d   :  { %v271_v34 = vmul.f32 %v270_v30, %v266_v32 }
 0x21f   :  { %v276_v35 = vadd.f32 %v275_v33, %v271_v34 }
 0x221   :  { %v277_v36 = vmax.f32 %v276_v35, 0.0 }
 0x223   :  { %v279_v38 = vpack.c.bf16 %v277_v36, %v277_v36  ;;  %278 = vst.msk [vmem:[#allocation2] sm:$0xff] %vm245_vm2, %v277_v36 }
 0x225   :  { %696 = vmatmul.mubr.msk.bf16.vlgmr.msra.gmra.mrb[4].mxu0 %vm245_vm2, %v279_v38 }
 0x226   :  { %764 = vmatpush3.bf16.msra.mxu0 %v862_v37  ;;  %767 = vmatprep.mubr.msk.bf16.mxu0 %vm943_vm0, %v942_v1 }
 0x227   :  { %765 = vmatprep.subr.bf16.mxu0 %v942_v1 }
 0x22a   :  { %766 = vmatpush3.bf16.msra.mxu0 %v863_v39 }
 0x22b   :  { %809 = vmatprep.subr.bf16.mxu0 %v945_v61 }
 0x22d   :  { %768 = vmatmul.mubr.msk.bf16.vlgmr.msra.gmra.mrb[8].mxu0 %vm61_vm1, %v38_v41 }
 0x22e   :  { %811 = vmatpush3.bf16.msra.mxu0 %v810_v62  ;;  %787 = vmatprep.mubr.msk.f32.mxu0 %vm943_vm0, %v942_v1  ;;  %v449_v1 = vld [vmem:[%s1203_s6 + $0x20] sm:$0xff]  ;;  %s946_s6 = smov [#allocation4]  }
 0x22f   :  { %812 = vmatprep.subr.bf16.mxu0 %v945_v61  ;;  %v816_v46 = vpack.c.bf16 %v450_v45, %v449_v1  ;;  %s652_s7 = sshll.u32 %s946_s6, 4  ;;  %s653_s7 = int_to_ptr.vmem [resolvable:$true] %s652_s7 }
 0x230   :  { %s872_s28 = scalar_lea.vmem %s653_s7, 128  ;;  %p877_p1 = scmp.lt.s32.totalorder %s653_s7, %s653_s7 }
 0x231   :  { %829 = vmatpush3.bf16.msra.mxu1 %v816_v46  ;;  %p873_p0 = scmp.ne.s32.totalorder %s653_s7, %s872_s28  ;;  %p878_p2 = scmp.lt.s32.totalorder %s872_s28, %s872_s28 }
 0x232   :  { %814 = vmatpush3.bf16.msra.mxu0 %v813_v44  ;;  %830 = vmatprep.subr.bf16.mxu1 %v945_v61 }
 0x233   :  { %815 = vmatprep.subr.bf16.mxu0 %v945_v61  ;;  %p879_p3 = por %p878_p2, %p877_p1 }
 0x235   :  { %832 = vmatpush3.bf16.msra.mxu1 %v819_v49  ;;  %p880_p4 = pnand %p879_p3, %p873_p0 }
 0x236   :  { %817 = vmatpush3.bf16.msra.mxu0 %v816_v46 }
 0x237   :  { %818 = vmatprep.subr.bf16.mxu0 %v945_v61 }
 0x23a   :  { %820 = vmatpush3.bf16.msra.mxu0 %v819_v49 }
 0x2f8   :  { %v373_v54 = vpop.f32.mrb[4].mxu0 }
 0x2f9   :  { %v374_v55 = vadd.f32 %v373_v54, %v291_v52  ;;  %v375_v56 = vpop.f32.mrb[5].mxu0 }
 0x2fa   :  { %v377_v57 = vpop.f32.mrb[6].mxu0  ;;  %v376_v58 = vadd.f32 %v375_v56, %v295_v53 }
 0x2fb   :  { %380 = vst [vmem:[#allocation4] sm:$0xff] %v374_v55  ;;  %v378_v59 = vpop.f32.mrb[7].mxu0 }
 0x2fc   :  { %v442_v60 = vrot.slane %v376_v58, 7 }
 0x300   :  { %v434_v61 = vpop.f32.mrb[8].mxu0 }
 0x301   :  { %v440_v62 = vadd.f32 %v434_v61, %v376_v58  ;;  %v443_v63 = vadd.f32 %v442_v60, %v434_v61  ;;  %v769_v0 = vpop.f32.mrb[9].mxu0 }
 0x302   :  { %v437_v2 = vpop.f32.mrb[10].mxu0 }
 0x303   :  { %v441_v3 = vmax.f32 %v440_v62, 0.0  ;;  %v444_v4 = vmax.f32 %v443_v63, 0.0  ;;  %v770_v5 = vpop.f32.mrb[11].mxu0 }
 0x305   :  { %788 = vmatmul.mubr.msk.f32.vlgmr.msra.gmra.mrb[12].mxu0 %vm245_vm2, %v441_v3  ;;  %807 = vmatmul.mubr.msk.f32.vlgmr.msra.gmra.mrb[4].mxu1 %vm245_vm2, %v444_v4 }
 0x306   :  { %883 = shalt.err (!%p880_p4)
}
 0x307   :  { %s884_s11 = scalar_lea.hbm %s1206_s9, 128 }
 0x308   :  { %p885_p5 = scmp.ne.s32.totalorder %s1206_s9, %s884_s11  ;;  %p888_p6 = scmp.lt.u32.totalorder %s884_s11, %s1206_s9 }
 0x30a   :  { %p890_p7 = pnand %p888_p6, %p885_p5 }
 0x30c   :  { %893 = shalt.err (!%p890_p7)
}
 0x30d   :  { %655 = dma.vmem_to_hbm [thread:$0]  %s653_s7, 128, %s1206_s9, [#allocation5]  }
 0x30e   :  { %s894_s5 = scalar_lea.vmem %s643_s27, 128  ;;  %p899_p9 = scmp.lt.s32.totalorder %s643_s27, %s643_s27 }
 0x30f   :  { %p895_p8 = scmp.ne.s32.totalorder %s643_s27, %s894_s5  ;;  %p900_p10 = scmp.lt.s32.totalorder %s894_s5, %s894_s5 }
 0x311   :  { %p901_p11 = por %p900_p10, %p899_p9 }
 0x313   :  { %p902_p12 = pnand %p901_p11, %p895_p8 }
 0x315   :  { %905 = shalt.err (!%p902_p12)
}
 0x316   :  { %s906_s1 = scalar_lea.hbm %s1205_s8, 128 }
 0x317   :  { %p907_p13 = scmp.ne.s32.totalorder %s1205_s8, %s906_s1  ;;  %p910_p0 = scmp.lt.u32.totalorder %s906_s1, %s1205_s8 }
 0x319   :  { %p912_p1 = pnand %p910_p0, %p907_p13 }
 0x31b   :  { %915 = shalt.err (!%p912_p1)
}
 0x31c   :  { %645 = dma.vmem_to_hbm [thread:$0]  %s643_s27, 128, %s1205_s8, [#allocation3]   ;;  %v455_v6 = vsub.s32 7, %v1052_v14  ;;  %vm603_vm3 = vcmask 15360   ;;  %vm634_vm4 = vcmask 8192  }
 0x31d   :  { %s948_s8 = smov [#allocation6]  }
 0x31e   :  { %v456_v7 = vrot.slane %v1058_v16, %v455_v6  ;;  %s662_s21 = sshll.u32 %s948_s8, 4  ;;  %s663_s21 = int_to_ptr.vmem [resolvable:$true] %s662_s21 }
 0x31f   :  { %s916_s22 = scalar_lea.vmem %s663_s21, 16  ;;  %s920_s23 = scalar_lea.vmem %s663_s21, 32 }
 0x320   :  { %p917_p2 = scmp.ne.s32.totalorder %s663_s21, %s916_s22  ;;  %p921_p3 = scmp.lt.s32.totalorder %s663_s21, %s663_s21 }
 0x321   :  { %p922_p4 = scmp.lt.s32.totalorder %s920_s23, %s916_s22 }
 0x323   :  { %p923_p5 = por %p922_p4, %p921_p3 }
 0x325   :  { %p924_p6 = pnand %p923_p5, %p917_p2 }
 0x3d8   :  { %v526_v8 = vpop.f32.mrb[12].mxu0  ;;  %v599_v9 = vpop.f32.mrb[4].mxu1 }
 0x3d9   :  { %v600_v10 = vadd.f32 %v599_v9, %v456_v7  ;;  %v789_v11 = vpop.f32.mrb[13].mxu0  ;;  %v808_v12 = vpop.f32.mrb[5].mxu1  ;;  %v527_v14 = vadd.f32 %v526_v8, %v456_v7 }
 0x3db   :  { %v612_v13 = vsel %vm603_vm3, %v600_v10, -inf  ;;  %v604_v25 = vsel %vm603_vm3, %v527_v14, 0.0 }
 0x3dc   :  { %v613_v15 = vrot.slane %v612_v13, 4  ;;  %v605_v28 = vrot.slane %v604_v25, 4 }
 0x3de   :  { %v614_v17 = vmax.f32 %v612_v13, %v613_v15  ;;  %v606_v31 = vadd.f32 %v605_v28, %v604_v25 }
 0x3e0   :  { %v615_v18 = vrot.slane %v614_v17, 2  ;;  %v607_v34 = vrot.slane %v606_v31, 2 }
 0x3e2   :  { %v616_v19 = vmax.f32 %v614_v17, %v615_v18  ;;  %v608_v36 = vadd.f32 %v607_v34, %v606_v31 }
 0x3e4   :  { %v617_v20 = vrot.slane %v616_v19, 1  ;;  %v609_v37 = vrot.slane %v608_v36, 1 }
 0x3e6   :  { %v618_v21 = vmax.f32 %v616_v19, %v617_v20  ;;  %v610_v38 = vadd.f32 %v609_v37, %v608_v36 }
 0x3e8   :  { %v619_v22 = vsub.f32 %v600_v10, %v618_v21  ;;  %v611_v41 = vmul.f32 0.125, %v610_v38 }
 0x3ea   :  { %v620_v23 = vmul.f32 1.442695, %v619_v22 }
 0x3ec   :  { %868 = vpow2.f32 %v620_v23 }
 0x3f6   :  { %v869_v24 = vpop.eup %868 }
 0x3f7   :  { %v622_v16 = vsel %vm603_vm3, %v869_v24, 0.0 }
 0x3f8   :  { %v623_v26 = vrot.slane %v622_v16, 4 }
 0x3fa   :  { %v624_v27 = vadd.f32 %v623_v26, %v622_v16 }
 0x3fc   :  { %v625_v29 = vrot.slane %v624_v27, 2 }
 0x3fe   :  { %v626_v30 = vadd.f32 %v625_v29, %v624_v27 }
 0x400   :  { %v627_v32 = vrot.slane %v626_v30, 1 }
 0x402   :  { %v628_v33 = vadd.f32 %v627_v32, %v626_v30 }
 0x404   :  { %v629_v35 = vmul.f32 0.125, %v628_v33 }
 0x406   :  { %870 = vlog2.f32 %v629_v35 }
 0x410   :  { %v871_v39 = vpop.eup %870 }
 0x411   :  { %v631_v40 = vmul.f32 0.6931472, %v871_v39 }
 0x413   :  { %v632_v42 = vadd.f32 %v631_v40, %v618_v21 }
 0x415   :  { %v633_v43 = vsub.f32 %v632_v42, %v611_v41 }
 0x417   :  { %635 = vst.msk [vmem:[#allocation6] sm:$0x1] %vm634_vm4, %v633_v43 }
 0x418   :  { %927 = shalt.err (!%p924_p6)
}
 0x419   :  { %s928_s6 = scalar_lea.hbm %s1207_s10, 16 }
 0x41a   :  { %p929_p7 = scmp.ne.s32.totalorder %s1207_s10, %s928_s6  ;;  %p932_p8 = scmp.lt.u32.totalorder %s928_s6, %s1207_s10 }
 0x41c   :  { %p934_p9 = pnand %p932_p8, %p929_p7 }
 0x41e   :  { %937 = shalt.err (!%p934_p9)
}
 0x41f   :  { %665 = dma.vmem_to_hbm [thread:$0]  %s663_s21, 16, %s1207_s10, [#allocation5]  }
 0x420   :  { %938 = dma.done.wait [#allocation3], 128  }
 0x421   :  { %939 = vsyncadd [#allocation3], 4294967168 }
 0x422   :  { %940 = dma.done.wait [#allocation5], 144  }
 0x423   :  { %941 = vsyncadd [#allocation5], 4294967152 }
 0x424   :  { %675 = vsyncpa [#allocation3], 1 }
 0x425   :  { %676 = vsyncpa [#allocation5], 1 }

</bundles_post_ra>
